<compile_context>
chip_gen: v6e
topology: v6e:2x2x1
jax: 0.10.0
libtpu: 0.0.40
codegen_flags: <defaults>
</compile_context>

<pallas_src>
import math
import numpy as np
import jax
import jax.numpy as jnp
from jax.experimental import pallas as pl
from jax.experimental.pallas import tpu as pltpu


def make_block_kernel(L, D, H, nb, nf):
    """One fused residual-attention-block kernel.

    Grid = (N//nb, nf): axis 0 folds nb batch elements per step ("parallel"); axis 1
    streams the MLP hidden dim ("arbitrary", innermost). Attention runs once per batch
    fold (chunk 0); the MLP accumulates into the resident output block.
    """
    dh = D // H
    M = nb * L
    scale = 1.0 / math.sqrt(dh)
    eps = 1e-5
    bf16 = jnp.bfloat16

    def layer_norm(v, g, b):
        mu = jnp.mean(v, axis=-1, keepdims=True)
        var = jnp.mean(jnp.square(v - mu), axis=-1, keepdims=True)
        return (v - mu) * jax.lax.rsqrt(var + eps) * g + b

    def split_heads(t):
        # (M, D) f32 -> (H*nb, L, dh) bf16, heads-major batch dim so both attention
        # contractions are plain 3-D batched matmuls ('bqd,bkd->bqk').
        stacked = jnp.stack([t[:, h * dh:(h + 1) * dh] for h in range(H)], axis=0)
        return stacked.reshape(H * nb, L, dh).astype(bf16)

    def kernel(x_ref, mask_ref, ln1g_ref, ln1b_ref, wqkv_ref, bqkv_ref,
               wo_ref, bo_ref, ln2g_ref, ln2b_ref, wfc_ref, bfc_ref,
               wpr_ref, bpr_ref, o_ref, h2_sc):
        fi = pl.program_id(1)

        # ---------- attention sub-block (once per batch fold) ----------
        @pl.when(fi == 0)
        def _():
            x = x_ref[...].reshape(M, D)                          # (M, D) f32
            h = layer_norm(x, ln1g_ref[...], ln1b_ref[...])
            qkv = jnp.dot(h.astype(bf16), wqkv_ref[...],
                          preferred_element_type=jnp.float32) + bqkv_ref[...]
            qh = split_heads(qkv[:, 0 * D:1 * D])                 # (H*nb, L, dh) bf16
            kh = split_heads(qkv[:, 1 * D:2 * D])
            vh = split_heads(qkv[:, 2 * D:3 * D])

            s = jnp.einsum('bqd,bkd->bqk', qh, kh,
                           preferred_element_type=jnp.float32) * scale + mask_ref[...]
            s = s - jnp.max(s, axis=-1, keepdims=True)
            p = jnp.exp(s)
            p = p * pl.reciprocal(jnp.sum(p, axis=-1, keepdims=True), approx=True)
            ctx = jnp.einsum('bqk,bkd->bqd', p.astype(bf16), vh,
                             preferred_element_type=jnp.float32)  # (H*nb, L, dh) f32
            ctx = ctx.reshape(H, M, dh)
            attn = jnp.concatenate([ctx[h] for h in range(H)], axis=-1)   # (M, D)
            attn = jnp.dot(attn.astype(bf16), wo_ref[...],
                           preferred_element_type=jnp.float32) + bo_ref[...]

            x_attn = x + attn
            o_ref[...] = x_attn.reshape(nb, L, D)   # residual accumulated in place
            h2_sc[...] = layer_norm(x_attn, ln2g_ref[...], ln2b_ref[...]).astype(bf16)

        # ---------- MLP: accumulate this hidden-dim chunk into o_ref ----------
        g = jnp.dot(h2_sc[...], wfc_ref[...],
                    preferred_element_type=jnp.float32) + bfc_ref[...]      # (M, tf)
        g = g * jax.nn.sigmoid(1.702 * g)                                   # QuickGELU
        upd = jnp.dot(g.astype(bf16), wpr_ref[...],
                      preferred_element_type=jnp.float32)                   # (M, D)
        o_ref[...] = o_ref[...] + upd.reshape(nb, L, D)

        @pl.when(fi == nf - 1)
        def _():
            o_ref[...] = o_ref[...] + bpr_ref[...]

    return kernel


def _pick_nb(N, L):
    """Fold nb batch elements per grid step so the matmul M dim (nb*L) fills the MXU,
    while keeping the (H*nb, L, L) softmax buffers bounded."""
    best = 1
    for nb in range(1, N + 1):
        if N % nb:
            continue
        if nb * L <= 512:
            best = nb
        if best * L >= 256:
            break
    return best


def _pick_mlp_tile(D):
    """Return (tf, nf). For D <= 1024 the bf16 c_fc/c_proj (~16*D^2 bytes) stay fully
    VMEM-resident; otherwise stream the hidden dim in large chunks."""
    F = 4 * D
    if D <= 1024:
        return F, 1
    for cand in (2048, 1024, 512, 256, 128):
        if F % cand == 0:
            return cand, F // cand
    return F, 1


def _vmem_limit_bytes(L, D, H, nb, tf):
    """Scoped-VMEM budget: double-buffered blocks + scratch + attention/MLP temporaries,
    capped generation-aware (128 MiB parts on v5e/v6e, 64 MiB on v7x)."""
    M = nb * L
    f32, b16 = 4, 2

    def sz(shape, item):
        return int(np.prod(shape)) * item

    blocks = (2 * sz((nb, L, D), f32)                      # x block + out block
              + sz((L, L), f32)
              + 4 * sz((1, D), f32)                        # ln1/ln2 gamma+beta
              + sz((D, 3 * D), b16) + sz((1, 3 * D), f32)  # in_proj
              + sz((D, D), b16) + sz((1, D), f32)          # out_proj
              + sz((D, tf), b16) + sz((1, tf), f32)        # c_fc chunk
              + sz((tf, D), b16) + sz((1, D), f32))        # c_proj chunk + bias
    scratch = sz((M, D), b16)
    attn_tmp = (sz((M, 3 * D), f32) + 3 * sz((M, D), b16)
                + 2 * sz((H * nb, L, L), f32) + 3 * sz((M, D), f32))
    mlp_tmp = 2 * sz((M, tf), f32) + sz((M, D), f32)
    need = 2 * blocks + scratch + attn_tmp + mlp_tmp

    try:
        cap = int(pltpu.get_tpu_info().vmem_capacity_bytes)
    except Exception:
        cap = 64 * 2 ** 20          # conservative fallback (v7x physical VMEM)
    return int(min(int(cap * 0.8), max(32 * 2 ** 20, need + (4 << 20))))


def residual_block_pallas(x_nld, mask, p, heads):
    """x_nld: (N, L, D) float32.  p: this layer's params (weights already bf16)."""
    N, L, D = x_nld.shape
    nb = _pick_nb(N, L)
    tf, nf = _pick_mlp_tile(D)
    bf16 = jnp.bfloat16

    kernel = make_block_kernel(L, D, heads, nb, nf)

    const = lambda shape: pl.BlockSpec(shape, lambda n, f: (0,) * len(shape))
    in_specs = [
        pl.BlockSpec((nb, L, D), lambda n, f: (n, 0, 0)),  # x (nb-way batch fold)
        const((L, L)),                                     # additive attn mask
        const((1, D)), const((1, D)),                      # ln1 gamma/beta
        const((D, 3 * D)), const((1, 3 * D)),              # in_proj W (bf16, transposed), bias
        const((D, D)), const((1, D)),                      # out_proj W (bf16, transposed), bias
        const((1, D)), const((1, D)),                      # ln2 gamma/beta
        pl.BlockSpec((D, tf), lambda n, f: (0, f)),        # c_fc W chunk (bf16)
        pl.BlockSpec((1, tf), lambda n, f: (0, f)),        # c_fc bias chunk
        pl.BlockSpec((tf, D), lambda n, f: (f, 0)),        # c_proj W chunk (bf16)
        const((1, D)),                                     # c_proj bias
    ]
    out_specs = pl.BlockSpec((nb, L, D), lambda n, f: (n, 0, 0))

    scratch_shapes = [pltpu.VMEM((nb * L, D), bf16)]       # LN2 output (matmul input dtype)

    return pl.pallas_call(
        kernel,
        out_shape=jax.ShapeDtypeStruct((N, L, D), jnp.float32),
        grid=(N // nb, nf),
        in_specs=in_specs,
        out_specs=out_specs,
        scratch_shapes=scratch_shapes,
        input_output_aliases={0: 0},
        compiler_params=pltpu.CompilerParams(
            dimension_semantics=("parallel", "arbitrary"),
            vmem_limit_bytes=_vmem_limit_bytes(L, D, heads, nb, tf)),
    )(x_nld, mask,
      p["ln1_g"], p["ln1_b"], p["w_qkv"], p["b_qkv"],
      p["w_out"], p["b_out"], p["ln2_g"], p["ln2_b"],
      p["w_fc"], p["b_fc"], p["w_proj"], p["b_proj"])


def prepare_params(params):
    """One-time cast of the matmul weights to bf16 (MXU input dtype).  Called once,
    outside the per-forward path, so no per-layer convert ops run under jit."""
    bf16 = jnp.bfloat16
    out = []
    for p in params:
        q = dict(p)
        for k in ("w_qkv", "w_out", "w_fc", "w_proj"):
            q[k] = p[k].astype(bf16)
        out.append(q)
    return out


def transformer_forward(x_lnd, params, mask, heads):
    """CLIP-style Transformer.forward: x is (L, N, D), returns (L, N, D)."""
    x = jnp.transpose(x_lnd, (1, 0, 2))            # -> (N, L, D)
    for p in params:
        x = residual_block_pallas(x, mask, p, heads)
    return jnp.transpose(x, (1, 0, 2))             # -> (L, N, D)


# ---------- pure-JAX reference (same math, mimics bf16 MXU inputs) ----------
def block_ref(x_nld, mask, p, heads):
    eps = 1e-5
    N, L, D = x_nld.shape
    dh = D // heads
    scale = 1.0 / math.sqrt(dh)
    r = lambda a: a.astype(jnp.bfloat16).astype(jnp.float32)   # bf16 input rounding

    def ln(v, g, b):
        mu = jnp.mean(v, axis=-1, keepdims=True)
        var = jnp.mean(jnp.square(v - mu), axis=-1, keepdims=True)
        return (v - mu) * jax.lax.rsqrt(var + eps) * g + b

    h = ln(x_nld, p["ln1_g"][0], p["ln1_b"][0])
    qkv = jnp.matmul(r(h), r(p["w_qkv"])) + p["b_qkv"][0]
    q, k, v = qkv[..., :D], qkv[..., D:2 * D], qkv[..., 2 * D:]
    q = q.reshape(N, L, heads, dh).transpose(0, 2, 1, 3)
    k = k.reshape(N, L, heads, dh).transpose(0, 2, 1, 3)
    v = v.reshape(N, L, heads, dh).transpose(0, 2, 1, 3)
    s = jnp.einsum("nhqd,nhkd->nhqk", r(q), r(k)) * scale + mask
    a = jax.nn.softmax(s, axis=-1)
    o = jnp.einsum("nhqk,nhkd->nhqd", r(a), r(v)).transpose(0, 2, 1, 3).reshape(N, L, D)
    x = x_nld + (jnp.matmul(r(o), r(p["w_out"])) + p["b_out"][0])
    h2 = ln(x, p["ln2_g"][0], p["ln2_b"][0])
    f = jnp.matmul(r(h2), r(p["w_fc"])) + p["b_fc"][0]
    f = f * jax.nn.sigmoid(1.702 * f)
    return x + (jnp.matmul(r(f), r(p["w_proj"])) + p["b_proj"][0])


def transformer_ref(x_lnd, params, mask, heads):
    x = jnp.transpose(x_lnd, (1, 0, 2))
    for p in params:
        x = block_ref(x, mask, p, heads)
    return jnp.transpose(x, (1, 0, 2))


def init_params(key, width, layers):
    D = width
    params = []
    for i in range(layers):
        ks = jax.random.split(jax.random.fold_in(key, i), 6)
        params.append(dict(
            ln1_g=jnp.ones((1, D), jnp.float32),
            ln1_b=jnp.zeros((1, D), jnp.float32),
            w_qkv=0.02 * jax.random.normal(ks[0], (D, 3 * D), jnp.float32),
            b_qkv=jnp.zeros((1, 3 * D), jnp.float32),
            w_out=0.02 * jax.random.normal(ks[1], (D, D), jnp.float32),
            b_out=jnp.zeros((1, D), jnp.float32),
            ln2_g=jnp.ones((1, D), jnp.float32),
            ln2_b=jnp.zeros((1, D), jnp.float32),
            w_fc=0.02 * jax.random.normal(ks[2], (D, 4 * D), jnp.float32),
            b_fc=jnp.zeros((1, 4 * D), jnp.float32),
            w_proj=0.02 * jax.random.normal(ks[3], (4 * D, D), jnp.float32),
            b_proj=jnp.zeros((1, D), jnp.float32),
        ))
    return params


if __name__ == "__main__":
    width, layers, heads = 32, 2, 4      # design_details vision_block='ResidualAttentionBlock'
    L, N = 8, 2                          # (seq, batch)

    key = jax.random.PRNGKey(0)
    kx, kp = jax.random.split(key)
    x = jax.random.normal(kx, (L, N, width), jnp.float32)    # CLIP layout (L, N, D)
    mask = jnp.zeros((L, L), jnp.float32)                    # attn_mask=None (vision path)
    params = init_params(kp, width, layers)
    params_dev = prepare_params(params)                      # weights cast to bf16 once

    fwd = jax.jit(transformer_forward, static_argnums=(3,))
    out = jax.block_until_ready(fwd(x, params_dev, mask, heads))

    ref = transformer_ref(x, params, mask, heads)
    assert out.shape == (L, N, width)
    max_err = float(jnp.max(jnp.abs(out - ref)))
    assert jnp.allclose(out, ref, atol=2e-2, rtol=2e-2), max_err

    print("KERNEL_OK")
</pallas_src>

<mosaic_0001>
module attributes {stable_mosaic.version = 11 : i64} {
  func.func @kernel(%arg0: i32, %arg1: i32, %arg2: memref<2x8x32xf32, #tpu.memory_space<vmem>>, %arg3: memref<8x8xf32, #tpu.memory_space<vmem>>, %arg4: memref<1x32xf32, #tpu.memory_space<vmem>>, %arg5: memref<1x32xf32, #tpu.memory_space<vmem>>, %arg6: memref<32x96xbf16, #tpu.memory_space<vmem>>, %arg7: memref<1x96xf32, #tpu.memory_space<vmem>>, %arg8: memref<32x32xbf16, #tpu.memory_space<vmem>>, %arg9: memref<1x32xf32, #tpu.memory_space<vmem>>, %arg10: memref<1x32xf32, #tpu.memory_space<vmem>>, %arg11: memref<1x32xf32, #tpu.memory_space<vmem>>, %arg12: memref<32x128xbf16, #tpu.memory_space<vmem>>, %arg13: memref<1x128xf32, #tpu.memory_space<vmem>>, %arg14: memref<128x32xbf16, #tpu.memory_space<vmem>>, %arg15: memref<1x32xf32, #tpu.memory_space<vmem>>, %arg16: memref<2x8x32xf32, #tpu.memory_space<vmem>>, %arg17: memref<16x32xbf16, #tpu.memory_space<vmem>>) attributes {dimension_semantics = [#tpu.dimension_semantics<parallel>, #tpu.dimension_semantics<arbitrary>], iteration_bounds = array<i64: 1, 1>, scalar_prefetch = 0 : i64, scratch_operands = 1 : i64, tpu.core_type = #tpu.core_type<tc>, window_params = [{transform_indices = @transform_0, window_bounds = array<i64: 2, 8, 32>}, {pipeline_mode = #tpu.pipeline_mode<synchronous>, transform_indices = @transform_1, window_bounds = array<i64: 8, 8>}, {pipeline_mode = #tpu.pipeline_mode<synchronous>, transform_indices = @transform_2, window_bounds = array<i64: 1, 32>}, {pipeline_mode = #tpu.pipeline_mode<synchronous>, transform_indices = @transform_3, window_bounds = array<i64: 1, 32>}, {pipeline_mode = #tpu.pipeline_mode<synchronous>, transform_indices = @transform_4, window_bounds = array<i64: 32, 96>}, {pipeline_mode = #tpu.pipeline_mode<synchronous>, transform_indices = @transform_5, window_bounds = array<i64: 1, 96>}, {pipeline_mode = #tpu.pipeline_mode<synchronous>, transform_indices = @transform_6, window_bounds = array<i64: 32, 32>}, {pipeline_mode = #tpu.pipeline_mode<synchronous>, transform_indices = @transform_7, window_bounds = array<i64: 1, 32>}, {pipeline_mode = #tpu.pipeline_mode<synchronous>, transform_indices = @transform_8, window_bounds = array<i64: 1, 32>}, {pipeline_mode = #tpu.pipeline_mode<synchronous>, transform_indices = @transform_9, window_bounds = array<i64: 1, 32>}, {transform_indices = @transform_10, window_bounds = array<i64: 32, 128>}, {transform_indices = @transform_11, window_bounds = array<i64: 1, 128>}, {transform_indices = @transform_12, window_bounds = array<i64: 128, 32>}, {pipeline_mode = #tpu.pipeline_mode<synchronous>, transform_indices = @transform_13, window_bounds = array<i64: 1, 32>}, {transform_indices = @transform_14, window_bounds = array<i64: 2, 8, 32>}]} {
    %c0_i32 = arith.constant 0 : i32
    %0 = arith.cmpi eq, %arg1, %c0_i32 : i32
    %1 = arith.extui %0 : i1 to i32
    %c0_i32_0 = arith.constant 0 : i32
    %2 = arith.cmpi ne, %1, %c0_i32_0 : i32
    scf.if %2 {
      %c0_19 = arith.constant 0 : index
      %c0_20 = arith.constant 0 : index
      %c0_21 = arith.constant 0 : index
      %27 = vector.load %arg2[%c0_19, %c0_20, %c0_21] : memref<2x8x32xf32, #tpu.memory_space<vmem>>, vector<2x8x32xf32>
      %28 = vector.shape_cast %27 : vector<2x8x32xf32> to vector<16x32xf32>
      %c0_22 = arith.constant 0 : index
      %c0_23 = arith.constant 0 : index
      %29 = vector.load %arg4[%c0_22, %c0_23] : memref<1x32xf32, #tpu.memory_space<vmem>>, vector<1x32xf32>
      %c0_24 = arith.constant 0 : index
      %c0_25 = arith.constant 0 : index
      %30 = vector.load %arg5[%c0_24, %c0_25] : memref<1x32xf32, #tpu.memory_space<vmem>>, vector<1x32xf32>
      %cst_26 = arith.constant dense<0.000000e+00> : vector<16xf32>
      %31 = vector.multi_reduction <add>, %28, %cst_26 [1] : vector<16x32xf32> to vector<16xf32>
      %32 = vector.shape_cast %31 : vector<16xf32> to vector<16x1xf32>
      %cst_27 = arith.constant 3.200000e+01 : f32
      %33 = vector.broadcast %cst_27 : f32 to vector<16x1xf32>
      %34 = arith.divf %32, %33 : vector<16x1xf32>
      %35 = vector.broadcast %34 : vector<16x1xf32> to vector<16x32xf32>
      %36 = arith.subf %28, %35 : vector<16x32xf32>
      %37 = arith.mulf %36, %36 : vector<16x32xf32>
      %cst_28 = arith.constant dense<0.000000e+00> : vector<16xf32>
      %38 = vector.multi_reduction <add>, %37, %cst_28 [1] : vector<16x32xf32> to vector<16xf32>
      %39 = vector.shape_cast %38 : vector<16xf32> to vector<16x1xf32>
      %cst_29 = arith.constant 3.200000e+01 : f32
      %40 = vector.broadcast %cst_29 : f32 to vector<16x1xf32>
      %41 = arith.divf %39, %40 : vector<16x1xf32>
      %42 = vector.broadcast %34 : vector<16x1xf32> to vector<16x32xf32>
      %43 = arith.subf %28, %42 : vector<16x32xf32>
      %cst_30 = arith.constant 9.99999974E-6 : f32
      %44 = vector.broadcast %cst_30 : f32 to vector<16x1xf32>
      %45 = arith.addf %41, %44 : vector<16x1xf32>
      %46 = math.rsqrt %45 : vector<16x1xf32>
      %47 = vector.broadcast %46 : vector<16x1xf32> to vector<16x32xf32>
      %48 = arith.mulf %43, %47 : vector<16x32xf32>
      %49 = vector.broadcast %29 : vector<1x32xf32> to vector<16x32xf32>
      %50 = arith.mulf %48, %49 : vector<16x32xf32>
      %51 = vector.broadcast %30 : vector<1x32xf32> to vector<16x32xf32>
      %52 = arith.addf %50, %51 : vector<16x32xf32>
      %53 = arith.truncf %52 : vector<16x32xf32> to vector<16x32xbf16>
      %c0_31 = arith.constant 0 : index
      %c0_32 = arith.constant 0 : index
      %54 = vector.load %arg6[%c0_31, %c0_32] : memref<32x96xbf16, #tpu.memory_space<vmem>>, vector<32x96xbf16>
      %cst_33 = arith.constant dense<0.000000e+00> : vector<16x96xf32>
      %55 = tpu.matmul %53, %54, %cst_33 {dimension_numbers = #tpu.dot_dimension_numbers<[1], [0], [0], [1], [0, 0, 1, 1], [], []>} : vector<16x32xbf16>, vector<32x96xbf16>, vector<16x96xf32> -> vector<16x96xf32>
      %c0_34 = arith.constant 0 : index
      %c0_35 = arith.constant 0 : index
      %56 = vector.load %arg7[%c0_34, %c0_35] : memref<1x96xf32, #tpu.memory_space<vmem>>, vector<1x96xf32>
      %57 = vector.broadcast %56 : vector<1x96xf32> to vector<16x96xf32>
      %58 = arith.addf %55, %57 : vector<16x96xf32>
      %59 = vector.extract_strided_slice %58 {offsets = [0, 0], sizes = [16, 32], strides = [1, 1]} : vector<16x96xf32> to vector<16x32xf32>
      %60 = vector.extract_strided_slice %59 {offsets = [0, 0], sizes = [16, 8], strides = [1, 1]} : vector<16x32xf32> to vector<16x8xf32>
      %61 = vector.extract_strided_slice %59 {offsets = [0, 8], sizes = [16, 8], strides = [1, 1]} : vector<16x32xf32> to vector<16x8xf32>
      %62 = vector.extract_strided_slice %59 {offsets = [0, 16], sizes = [16, 8], strides = [1, 1]} : vector<16x32xf32> to vector<16x8xf32>
      %63 = vector.extract_strided_slice %59 {offsets = [0, 24], sizes = [16, 8], strides = [1, 1]} : vector<16x32xf32> to vector<16x8xf32>
      %64 = vector.shape_cast %60 : vector<16x8xf32> to vector<1x16x8xf32>
      %65 = vector.shape_cast %61 : vector<16x8xf32> to vector<1x16x8xf32>
      %66 = vector.shape_cast %62 : vector<16x8xf32> to vector<1x16x8xf32>
      %67 = vector.shape_cast %63 : vector<16x8xf32> to vector<1x16x8xf32>
      %68 = tpu.concatenate %64, %65, %66, %67 in 0 : vector<1x16x8xf32>, vector<1x16x8xf32>, vector<1x16x8xf32>, vector<1x16x8xf32> -> vector<4x16x8xf32>
      %69 = vector.shape_cast %68 : vector<4x16x8xf32> to vector<8x8x8xf32>
      %70 = arith.truncf %69 : vector<8x8x8xf32> to vector<8x8x8xbf16>
      %71 = vector.extract_strided_slice %58 {offsets = [0, 32], sizes = [16, 32], strides = [1, 1]} : vector<16x96xf32> to vector<16x32xf32>
      %72 = vector.extract_strided_slice %71 {offsets = [0, 0], sizes = [16, 8], strides = [1, 1]} : vector<16x32xf32> to vector<16x8xf32>
      %73 = vector.extract_strided_slice %71 {offsets = [0, 8], sizes = [16, 8], strides = [1, 1]} : vector<16x32xf32> to vector<16x8xf32>
      %74 = vector.extract_strided_slice %71 {offsets = [0, 16], sizes = [16, 8], strides = [1, 1]} : vector<16x32xf32> to vector<16x8xf32>
      %75 = vector.extract_strided_slice %71 {offsets = [0, 24], sizes = [16, 8], strides = [1, 1]} : vector<16x32xf32> to vector<16x8xf32>
      %76 = vector.shape_cast %72 : vector<16x8xf32> to vector<1x16x8xf32>
      %77 = vector.shape_cast %73 : vector<16x8xf32> to vector<1x16x8xf32>
      %78 = vector.shape_cast %74 : vector<16x8xf32> to vector<1x16x8xf32>
      %79 = vector.shape_cast %75 : vector<16x8xf32> to vector<1x16x8xf32>
      %80 = tpu.concatenate %76, %77, %78, %79 in 0 : vector<1x16x8xf32>, vector<1x16x8xf32>, vector<1x16x8xf32>, vector<1x16x8xf32> -> vector<4x16x8xf32>
      %81 = vector.shape_cast %80 : vector<4x16x8xf32> to vector<8x8x8xf32>
      %82 = arith.truncf %81 : vector<8x8x8xf32> to vector<8x8x8xbf16>
      %83 = vector.extract_strided_slice %58 {offsets = [0, 64], sizes = [16, 32], strides = [1, 1]} : vector<16x96xf32> to vector<16x32xf32>
      %84 = vector.extract_strided_slice %83 {offsets = [0, 0], sizes = [16, 8], strides = [1, 1]} : vector<16x32xf32> to vector<16x8xf32>
      %85 = vector.extract_strided_slice %83 {offsets = [0, 8], sizes = [16, 8], strides = [1, 1]} : vector<16x32xf32> to vector<16x8xf32>
      %86 = vector.extract_strided_slice %83 {offsets = [0, 16], sizes = [16, 8], strides = [1, 1]} : vector<16x32xf32> to vector<16x8xf32>
      %87 = vector.extract_strided_slice %83 {offsets = [0, 24], sizes = [16, 8], strides = [1, 1]} : vector<16x32xf32> to vector<16x8xf32>
      %88 = vector.shape_cast %84 : vector<16x8xf32> to vector<1x16x8xf32>
      %89 = vector.shape_cast %85 : vector<16x8xf32> to vector<1x16x8xf32>
      %90 = vector.shape_cast %86 : vector<16x8xf32> to vector<1x16x8xf32>
      %91 = vector.shape_cast %87 : vector<16x8xf32> to vector<1x16x8xf32>
      %92 = tpu.concatenate %88, %89, %90, %91 in 0 : vector<1x16x8xf32>, vector<1x16x8xf32>, vector<1x16x8xf32>, vector<1x16x8xf32> -> vector<4x16x8xf32>
      %93 = vector.shape_cast %92 : vector<4x16x8xf32> to vector<8x8x8xf32>
      %94 = arith.truncf %93 : vector<8x8x8xf32> to vector<8x8x8xbf16>
      "tpu.trace_start"() <{level = 10 : i32, message = "bqd,bkd->bqk"}> : () -> ()
      %cst_36 = arith.constant dense<0.000000e+00> : vector<8x8x8xf32>
      %95 = tpu.matmul %70, %82, %cst_36 {dimension_numbers = #tpu.dot_dimension_numbers<[2], [2], [1], [1], [0, 0, 0, 1, 1, 1], [0], [0]>} : vector<8x8x8xbf16>, vector<8x8x8xbf16>, vector<8x8x8xf32> -> vector<8x8x8xf32>
      "tpu.trace_stop"() : () -> ()
      %cst_37 = arith.constant 0.353553385 : f32
      %96 = vector.broadcast %cst_37 : f32 to vector<8x8x8xf32>
      %97 = arith.mulf %95, %96 : vector<8x8x8xf32>
      %c0_38 = arith.constant 0 : index
      %c0_39 = arith.constant 0 : index
      %98 = vector.load %arg3[%c0_38, %c0_39] : memref<8x8xf32, #tpu.memory_space<vmem>>, vector<8x8xf32>
      %99 = vector.shape_cast %98 : vector<8x8xf32> to vector<1x8x8xf32>
      %100 = vector.broadcast %99 : vector<1x8x8xf32> to vector<8x8x8xf32>
      %101 = arith.addf %97, %100 : vector<8x8x8xf32>
      %cst_40 = arith.constant dense<0xFF800000> : vector<8x8xf32>
      %102 = vector.multi_reduction <maximumf>, %101, %cst_40 [2] : vector<8x8x8xf32> to vector<8x8xf32>
      %103 = vector.shape_cast %102 : vector<8x8xf32> to vector<8x8x1xf32>
      %104 = vector.broadcast %103 : vector<8x8x1xf32> to vector<8x8x8xf32>
      %105 = arith.subf %101, %104 : vector<8x8x8xf32>
      %106 = math.exp %105 : vector<8x8x8xf32>
      %cst_41 = arith.constant dense<0.000000e+00> : vector<8x8xf32>
      %107 = vector.multi_reduction <add>, %106, %cst_41 [2] : vector<8x8x8xf32> to vector<8x8xf32>
      %108 = vector.shape_cast %107 : vector<8x8xf32> to vector<8x8x1xf32>
      %109 = tpu.reciprocal %108 {approx = true} : vector<8x8x1xf32> -> vector<8x8x1xf32>
      %110 = vector.broadcast %109 : vector<8x8x1xf32> to vector<8x8x8xf32>
      %111 = arith.mulf %106, %110 : vector<8x8x8xf32>
      %112 = arith.truncf %111 : vector<8x8x8xf32> to vector<8x8x8xbf16>
      "tpu.trace_start"() <{level = 10 : i32, message = "bqk,bkd->bqd"}> : () -> ()
      %cst_42 = arith.constant dense<0.000000e+00> : vector<8x8x8xf32>
      %113 = tpu.matmul %112, %94, %cst_42 {dimension_numbers = #tpu.dot_dimension_numbers<[2], [1], [1], [2], [0, 0, 0, 1, 1, 2], [0], [0]>} : vector<8x8x8xbf16>, vector<8x8x8xbf16>, vector<8x8x8xf32> -> vector<8x8x8xf32>
      "tpu.trace_stop"() : () -> ()
      %114 = vector.shape_cast %113 : vector<8x8x8xf32> to vector<4x16x8xf32>
      %115 = vector.extract_strided_slice %114 {offsets = [0, 0, 0], sizes = [1, 16, 8], strides = [1, 1, 1]} : vector<4x16x8xf32> to vector<1x16x8xf32>
      %116 = vector.shape_cast %115 : vector<1x16x8xf32> to vector<16x8xf32>
      %117 = vector.extract_strided_slice %114 {offsets = [1, 0, 0], sizes = [1, 16, 8], strides = [1, 1, 1]} : vector<4x16x8xf32> to vector<1x16x8xf32>
      %118 = vector.shape_cast %117 : vector<1x16x8xf32> to vector<16x8xf32>
      %119 = vector.extract_strided_slice %114 {offsets = [2, 0, 0], sizes = [1, 16, 8], strides = [1, 1, 1]} : vector<4x16x8xf32> to vector<1x16x8xf32>
      %120 = vector.shape_cast %119 : vector<1x16x8xf32> to vector<16x8xf32>
      %121 = vector.extract_strided_slice %114 {offsets = [3, 0, 0], sizes = [1, 16, 8], strides = [1, 1, 1]} : vector<4x16x8xf32> to vector<1x16x8xf32>
      %122 = vector.shape_cast %121 : vector<1x16x8xf32> to vector<16x8xf32>
      %123 = tpu.concatenate %116, %118, %120, %122 in 1 : vector<16x8xf32>, vector<16x8xf32>, vector<16x8xf32>, vector<16x8xf32> -> vector<16x32xf32>
      %124 = arith.truncf %123 : vector<16x32xf32> to vector<16x32xbf16>
      %c0_43 = arith.constant 0 : index
      %c0_44 = arith.constant 0 : index
      %125 = vector.load %arg8[%c0_43, %c0_44] : memref<32x32xbf16, #tpu.memory_space<vmem>>, vector<32x32xbf16>
      %cst_45 = arith.constant dense<0.000000e+00> : vector<16x32xf32>
      %126 = tpu.matmul %124, %125, %cst_45 {dimension_numbers = #tpu.dot_dimension_numbers<[1], [0], [0], [1], [0, 0, 1, 1], [], []>} : vector<16x32xbf16>, vector<32x32xbf16>, vector<16x32xf32> -> vector<16x32xf32>
      %c0_46 = arith.constant 0 : index
      %c0_47 = arith.constant 0 : index
      %127 = vector.load %arg9[%c0_46, %c0_47] : memref<1x32xf32, #tpu.memory_space<vmem>>, vector<1x32xf32>
      %128 = vector.broadcast %127 : vector<1x32xf32> to vector<16x32xf32>
      %129 = arith.addf %126, %128 : vector<16x32xf32>
      %130 = arith.addf %28, %129 : vector<16x32xf32>
      %131 = vector.shape_cast %130 : vector<16x32xf32> to vector<2x8x32xf32>
      %c0_48 = arith.constant 0 : index
      %c0_49 = arith.constant 0 : index
      %c0_50 = arith.constant 0 : index
      %132 = vector.load %arg16[%c0_48, %c0_49, %c0_50] : memref<2x8x32xf32, #tpu.memory_space<vmem>>, vector<2x8x32xf32>
      tpu.vector_store %arg16[%c0_48, %c0_49, %c0_50], %131 {strides = array<i32>} : memref<2x8x32xf32, #tpu.memory_space<vmem>>, vector<2x8x32xf32>,
      %c0_51 = arith.constant 0 : index
      %c0_52 = arith.constant 0 : index
      %133 = vector.load %arg10[%c0_51, %c0_52] : memref<1x32xf32, #tpu.memory_space<vmem>>, vector<1x32xf32>
      %c0_53 = arith.constant 0 : index
      %c0_54 = arith.constant 0 : index
      %134 = vector.load %arg11[%c0_53, %c0_54] : memref<1x32xf32, #tpu.memory_space<vmem>>, vector<1x32xf32>
      %cst_55 = arith.constant dense<0.000000e+00> : vector<16xf32>
      %135 = vector.multi_reduction <add>, %130, %cst_55 [1] : vector<16x32xf32> to vector<16xf32>
      %136 = vector.shape_cast %135 : vector<16xf32> to vector<16x1xf32>
      %cst_56 = arith.constant 3.200000e+01 : f32
      %137 = vector.broadcast %cst_56 : f32 to vector<16x1xf32>
      %138 = arith.divf %136, %137 : vector<16x1xf32>
      %139 = vector.broadcast %138 : vector<16x1xf32> to vector<16x32xf32>
      %140 = arith.subf %130, %139 : vector<16x32xf32>
      %141 = arith.mulf %140, %140 : vector<16x32xf32>
      %cst_57 = arith.constant dense<0.000000e+00> : vector<16xf32>
      %142 = vector.multi_reduction <add>, %141, %cst_57 [1] : vector<16x32xf32> to vector<16xf32>
      %143 = vector.shape_cast %142 : vector<16xf32> to vector<16x1xf32>
      %cst_58 = arith.constant 3.200000e+01 : f32
      %144 = vector.broadcast %cst_58 : f32 to vector<16x1xf32>
      %145 = arith.divf %143, %144 : vector<16x1xf32>
      %146 = vector.broadcast %138 : vector<16x1xf32> to vector<16x32xf32>
      %147 = arith.subf %130, %146 : vector<16x32xf32>
      %cst_59 = arith.constant 9.99999974E-6 : f32
      %148 = vector.broadcast %cst_59 : f32 to vector<16x1xf32>
      %149 = arith.addf %145, %148 : vector<16x1xf32>
      %150 = math.rsqrt %149 : vector<16x1xf32>
      %151 = vector.broadcast %150 : vector<16x1xf32> to vector<16x32xf32>
      %152 = arith.mulf %147, %151 : vector<16x32xf32>
      %153 = vector.broadcast %133 : vector<1x32xf32> to vector<16x32xf32>
      %154 = arith.mulf %152, %153 : vector<16x32xf32>
      %155 = vector.broadcast %134 : vector<1x32xf32> to vector<16x32xf32>
      %156 = arith.addf %154, %155 : vector<16x32xf32>
      %157 = arith.truncf %156 : vector<16x32xf32> to vector<16x32xbf16>
      %c0_60 = arith.constant 0 : index
      %c0_61 = arith.constant 0 : index
      %158 = vector.load %arg17[%c0_60, %c0_61] : memref<16x32xbf16, #tpu.memory_space<vmem>>, vector<16x32xbf16>
      tpu.vector_store %arg17[%c0_60, %c0_61], %157 {strides = array<i32>} : memref<16x32xbf16, #tpu.memory_space<vmem>>, vector<16x32xbf16>,
    } else {
    }
    %c0 = arith.constant 0 : index
    %c0_1 = arith.constant 0 : index
    %3 = vector.load %arg17[%c0, %c0_1] : memref<16x32xbf16, #tpu.memory_space<vmem>>, vector<16x32xbf16>
    %c0_2 = arith.constant 0 : index
    %c0_3 = arith.constant 0 : index
    %4 = vector.load %arg12[%c0_2, %c0_3] : memref<32x128xbf16, #tpu.memory_space<vmem>>, vector<32x128xbf16>
    %cst = arith.constant dense<0.000000e+00> : vector<16x128xf32>
    %5 = tpu.matmul %3, %4, %cst {dimension_numbers = #tpu.dot_dimension_numbers<[1], [0], [0], [1], [0, 0, 1, 1], [], []>} : vector<16x32xbf16>, vector<32x128xbf16>, vector<16x128xf32> -> vector<16x128xf32>
    %c0_4 = arith.constant 0 : index
    %c0_5 = arith.constant 0 : index
    %6 = vector.load %arg13[%c0_4, %c0_5] : memref<1x128xf32, #tpu.memory_space<vmem>>, vector<1x128xf32>
    %7 = vector.broadcast %6 : vector<1x128xf32> to vector<16x128xf32>
    %8 = arith.addf %5, %7 : vector<16x128xf32>
    %cst_6 = arith.constant 1.702000e+00 : f32
    %9 = vector.broadcast %cst_6 : f32 to vector<16x128xf32>
    %10 = arith.mulf %9, %8 : vector<16x128xf32>
    %11 = arith.negf %10 : vector<16x128xf32>
    %12 = math.exp %11 : vector<16x128xf32>
    %cst_7 = arith.constant 1.000000e+00 : f32
    %13 = vector.broadcast %cst_7 : f32 to vector<16x128xf32>
    %14 = arith.addf %13, %12 : vector<16x128xf32>
    %15 = arith.divf %13, %14 : vector<16x128xf32>
    %16 = arith.mulf %8, %15 : vector<16x128xf32>
    %17 = arith.truncf %16 : vector<16x128xf32> to vector<16x128xbf16>
    %c0_8 = arith.constant 0 : index
    %c0_9 = arith.constant 0 : index
    %18 = vector.load %arg14[%c0_8, %c0_9] : memref<128x32xbf16, #tpu.memory_space<vmem>>, vector<128x32xbf16>
    %cst_10 = arith.constant dense<0.000000e+00> : vector<16x32xf32>
    %19 = tpu.matmul %17, %18, %cst_10 {dimension_numbers = #tpu.dot_dimension_numbers<[1], [0], [0], [1], [0, 0, 1, 1], [], []>} : vector<16x128xbf16>, vector<128x32xbf16>, vector<16x32xf32> -> vector<16x32xf32>
    %c0_11 = arith.constant 0 : index
    %c0_12 = arith.constant 0 : index
    %c0_13 = arith.constant 0 : index
    %20 = vector.load %arg16[%c0_11, %c0_12, %c0_13] : memref<2x8x32xf32, #tpu.memory_space<vmem>>, vector<2x8x32xf32>
    %21 = vector.shape_cast %19 : vector<16x32xf32> to vector<2x8x32xf32>
    %22 = arith.addf %20, %21 : vector<2x8x32xf32>
    %c0_14 = arith.constant 0 : index
    %c0_15 = arith.constant 0 : index
    %c0_16 = arith.constant 0 : index
    %23 = vector.load %arg16[%c0_14, %c0_15, %c0_16] : memref<2x8x32xf32, #tpu.memory_space<vmem>>, vector<2x8x32xf32>
    tpu.vector_store %arg16[%c0_14, %c0_15, %c0_16], %22 {strides = array<i32>} : memref<2x8x32xf32, #tpu.memory_space<vmem>>, vector<2x8x32xf32>,
    %c0_i32_17 = arith.constant 0 : i32
    %24 = arith.cmpi eq, %arg1, %c0_i32_17 : i32
    %25 = arith.extui %24 : i1 to i32
    %c0_i32_18 = arith.constant 0 : i32
    %26 = arith.cmpi ne, %25, %c0_i32_18 : i32
    scf.if %26 {
      %c0_19 = arith.constant 0 : index
      %c0_20 = arith.constant 0 : index
      %c0_21 = arith.constant 0 : index
      %27 = vector.load %arg16[%c0_19, %c0_20, %c0_21] : memref<2x8x32xf32, #tpu.memory_space<vmem>>, vector<2x8x32xf32>
      %c0_22 = arith.constant 0 : index
      %c0_23 = arith.constant 0 : index
      %28 = vector.load %arg15[%c0_22, %c0_23] : memref<1x32xf32, #tpu.memory_space<vmem>>, vector<1x32xf32>
      %29 = vector.shape_cast %28 : vector<1x32xf32> to vector<1x1x32xf32>
      %30 = vector.broadcast %29 : vector<1x1x32xf32> to vector<2x8x32xf32>
      %31 = arith.addf %27, %30 : vector<2x8x32xf32>
      %c0_24 = arith.constant 0 : index
      %c0_25 = arith.constant 0 : index
      %c0_26 = arith.constant 0 : index
      %32 = vector.load %arg16[%c0_24, %c0_25, %c0_26] : memref<2x8x32xf32, #tpu.memory_space<vmem>>, vector<2x8x32xf32>
      tpu.vector_store %arg16[%c0_24, %c0_25, %c0_26], %31 {strides = array<i32>} : memref<2x8x32xf32, #tpu.memory_space<vmem>>, vector<2x8x32xf32>,
    } else {
    }
    return
  }
  func.func @transform_0(%arg0: i32, %arg1: i32) -> (i32, i32, i32) {
    %c0_i32 = arith.constant 0 : i32
    %c0_i32_0 = arith.constant 0 : i32
    %c0_i32_1 = arith.constant 0 : i32
    return %arg0, %c0_i32, %c0_i32_0 : i32, i32, i32
  }
  func.func @transform_1(%arg0: i32, %arg1: i32) -> (i32, i32) {
    %c0_i32 = arith.constant 0 : i32
    %c0_i32_0 = arith.constant 0 : i32
    %c0_i32_1 = arith.constant 0 : i32
    return %c0_i32, %c0_i32_0 : i32, i32
  }
  func.func @transform_2(%arg0: i32, %arg1: i32) -> (i32, i32) {
    %c0_i32 = arith.constant 0 : i32
    %c0_i32_0 = arith.constant 0 : i32
    %c0_i32_1 = arith.constant 0 : i32
    return %c0_i32, %c0_i32_0 : i32, i32
  }
  func.func @transform_3(%arg0: i32, %arg1: i32) -> (i32, i32) {
    %c0_i32 = arith.constant 0 : i32
    %c0_i32_0 = arith.constant 0 : i32
    %c0_i32_1 = arith.constant 0 : i32
    return %c0_i32, %c0_i32_0 : i32, i32
  }
  func.func @transform_4(%arg0: i32, %arg1: i32) -> (i32, i32) {
    %c0_i32 = arith.constant 0 : i32
    %c0_i32_0 = arith.constant 0 : i32
    %c0_i32_1 = arith.constant 0 : i32
    return %c0_i32, %c0_i32_0 : i32, i32
  }
  func.func @transform_5(%arg0: i32, %arg1: i32) -> (i32, i32) {
    %c0_i32 = arith.constant 0 : i32
    %c0_i32_0 = arith.constant 0 : i32
    %c0_i32_1 = arith.constant 0 : i32
    return %c0_i32, %c0_i32_0 : i32, i32
  }
  func.func @transform_6(%arg0: i32, %arg1: i32) -> (i32, i32) {
    %c0_i32 = arith.constant 0 : i32
    %c0_i32_0 = arith.constant 0 : i32
    %c0_i32_1 = arith.constant 0 : i32
    return %c0_i32, %c0_i32_0 : i32, i32
  }
  func.func @transform_7(%arg0: i32, %arg1: i32) -> (i32, i32) {
    %c0_i32 = arith.constant 0 : i32
    %c0_i32_0 = arith.constant 0 : i32
    %c0_i32_1 = arith.constant 0 : i32
    return %c0_i32, %c0_i32_0 : i32, i32
  }
  func.func @transform_8(%arg0: i32, %arg1: i32) -> (i32, i32) {
    %c0_i32 = arith.constant 0 : i32
    %c0_i32_0 = arith.constant 0 : i32
    %c0_i32_1 = arith.constant 0 : i32
    return %c0_i32, %c0_i32_0 : i32, i32
  }
  func.func @transform_9(%arg0: i32, %arg1: i32) -> (i32, i32) {
    %c0_i32 = arith.constant 0 : i32
    %c0_i32_0 = arith.constant 0 : i32
    %c0_i32_1 = arith.constant 0 : i32
    return %c0_i32, %c0_i32_0 : i32, i32
  }
  func.func @transform_10(%arg0: i32, %arg1: i32) -> (i32, i32) {
    %c0_i32 = arith.constant 0 : i32
    %c0_i32_0 = arith.constant 0 : i32
    return %c0_i32, %arg1 : i32, i32
  }
  func.func @transform_11(%arg0: i32, %arg1: i32) -> (i32, i32) {
    %c0_i32 = arith.constant 0 : i32
    %c0_i32_0 = arith.constant 0 : i32
    return %c0_i32, %arg1 : i32, i32
  }
  func.func @transform_12(%arg0: i32, %arg1: i32) -> (i32, i32) {
    %c0_i32 = arith.constant 0 : i32
    %c0_i32_0 = arith.constant 0 : i32
    return %arg1, %c0_i32 : i32, i32
  }
  func.func @transform_13(%arg0: i32, %arg1: i32) -> (i32, i32) {
    %c0_i32 = arith.constant 0 : i32
    %c0_i32_0 = arith.constant 0 : i32
    %c0_i32_1 = arith.constant 0 : i32
    return %c0_i32, %c0_i32_0 : i32, i32
  }
  func.func @transform_14(%arg0: i32, %arg1: i32) -> (i32, i32, i32) {
    %c0_i32 = arith.constant 0 : i32
    %c0_i32_0 = arith.constant 0 : i32
    %c0_i32_1 = arith.constant 0 : i32
    return %arg0, %c0_i32, %c0_i32_0 : i32, i32, i32
  }
}

</mosaic_0001>

<bundles_post_ra>
// kernel: transformer_forward.2
= control target key start
LH: loop header
LB: loop body
LE: loop exit
PB: predicated region body
PF: predicated region fallthrough
CT: control target
= control target key end

     0   :  { %vm56_vm0 = vcmask 261120   ;;  %v1810_v14 = vmov 0.0   ;;  %vm1811_vm1 = vmmov 0   ;;  %s1814_s25 = smov 104   ;;  %s1815_s26 = smov 96   ;;  %vm199_vm2 = vcmask 64512   ;;  %s2230_s0 = inlined_call_operand.vmem [shape: f32[2,8,32], index: 0, kind: input, shape index: {}, may-alias: {0,14}]   ;;  %s2231_s4 = inlined_call_operand.vmem [shape: bf16[32,96], index: 4, kind: input, shape index: {}]   ;;  %s2232_s2 = inlined_call_operand.vmem [shape: f32[1,32], index: 2, kind: input, shape index: {}]   ;;  %s2233_s3 = inlined_call_operand.vmem [shape: f32[1,32], index: 3, kind: input, shape index: {}]   ;;  %s2234_s5 = inlined_call_operand.vmem [shape: f32[1,96], index: 5, kind: input, shape index: {}]   ;;  %s2235_s1 = inlined_call_operand.vmem [shape: f32[8,8], index: 1, kind: input, shape index: {}]   ;;  %s2236_s6 = inlined_call_operand.vmem [shape: bf16[32,32], index: 6, kind: input, shape index: {}]   ;;  %s2237_s7 = inlined_call_operand.vmem [shape: f32[1,32], index: 7, kind: input, shape index: {}]   ;;  %s2238_s14 = inlined_call_operand.vmem [shape: f32[2,8,32], index: 14, kind: output, shape index: {}, may-alias: {0,14}]   ;;  %s2239_s10 = inlined_call_operand.vmem [shape: bf16[32,128], index: 10, kind: input, shape index: {}]   ;;  %s2240_s8 = inlined_call_operand.vmem [shape: f32[1,32], index: 8, kind: input, shape index: {}]   ;;  %s2241_s9 = inlined_call_operand.vmem [shape: f32[1,32], index: 9, kind: input, shape index: {}]   ;;  %s2242_s12 = inlined_call_operand.vmem [shape: bf16[128,32], index: 12, kind: input, shape index: {}]   ;;  %s2243_s11 = inlined_call_operand.vmem [shape: f32[1,128], index: 11, kind: input, shape index: {}]   ;;  %s2244_s13 = inlined_call_operand.vmem [shape: f32[1,32], index: 13, kind: input, shape index: {}]  }
   0x1   :  { %v1898_v0 = vld [vmem:[%s2230_s0] sm:$0xff]  ;;  %v1903_v1 = vld [vmem:[%s2230_s0 + $0x8] sm:$0xff]  ;;  %1567 = vmatprep.subr.bf16.mxu0 %v1810_v14  ;;  %1571 = vmatprep.mubr.msk.bf16.mxu0 %vm1811_vm1, %v1810_v14  ;;  %vm707_vm3 = vcmask 1043456   ;;  %s1818_s0 = smov 16   ;;  %s1819_s17 = smov 24   ;;  %vm1113_vm4 = vcmask 130048  }
   0x2   :  { %v57_v2 = vsel %vm56_vm0, %v1898_v0, 0.0  ;;  %v60_v3 = vsel %vm56_vm0, %v1903_v1, 0.0  ;;  %v1747_v15 = vld [vmem:[%s2231_s4 + $0x8] sm:$0xff]   ;;  %1587 = vmatprep.subr.bf16.mxu1 %v1810_v14  ;;  %1589 = vmatprep.mubr.msk.bf16.mxu1 %vm1811_vm1, %v1810_v14  ;;  %v1748_v16 = vld [vmem:[%s2231_s4] sm:$0xff]   ;;  %vm1116_vm5 = vcmask 195584   ;;  %vm1243_vm6 = vcmask 257024  }
   0x3   :  { %58 = vadd.xlane.f32.xlu0 %v57_v2  ;;  %1568 = vmatpush3.bf16.msra.mxu0 %v1747_v15  ;;  %v1469_v25 = vld [vmem:[%s2232_s2] ss:$0 sm:$0xff]  ;;  %s1812_s2 = smov 112  }
   0x4   :  { %1569 = vmatprep.subr.bf16.mxu0 %v1810_v14  ;;  %v1470_v29 = vld [vmem:[%s2233_s3] ss:$0 sm:$0xff]  ;;  %s1813_s3 = smov 120  }
   0x5   :  { %v1471_v35 = vld [vmem:[%s2234_s5] ss:$0 sm:$0xff]  ;;  %s1816_s5 = smov 64  }
   0x7   :  { %61 = vadd.xlane.f32.xlu0 %v60_v3  ;;  %1570 = vmatpush3.bf16.msra.mxu0 %v1748_v16 }
   0x8   :  { %1575 = vmatprep.subr.bf16.mxu0 %v1810_v14 }
  0x8c   :  { %v59_v4 = vpop.xlane.xlu0 %58 }
  0x8d   :  { %v64_v5 = vmul.f32 0.03125, %v59_v4 }
  0x8f   :  { %v66_v6 = vsub.f32 %v1898_v0, %v64_v5 }
  0x90   :  { %v62_v7 = vpop.xlane.xlu0 %61 }
  0x91   :  { %v65_v8 = vmul.f32 0.03125, %v62_v7  ;;  %v68_v9 = vmul.f32 %v66_v6, %v66_v6 }
  0x93   :  { %v67_v10 = vsub.f32 %v1903_v1, %v65_v8  ;;  %v70_v11 = vsel %vm56_vm0, %v68_v9, 0.0 }
  0x94   :  { %71 = vadd.xlane.f32.xlu1 %v70_v11 }
  0x95   :  { %v69_v12 = vmul.f32 %v67_v10, %v67_v10 }
  0x97   :  { %v73_v13 = vsel %vm56_vm0, %v69_v12, 0.0 }
  0x98   :  { %74 = vadd.xlane.f32.xlu1 %v73_v13 }
 0x11d   :  { %v72_v17 = vpop.xlane.xlu1 %71 }
 0x11e   :  { %v76_v18 = vmul.f32 0.03125, %v72_v17  ;;  %v597_v17 = vld [vmem:[%s2235_s1] sm:$0xff]  ;;  %s1817_s1 = smov 8  }
 0x120   :  { %v78_v19 = vadd.f32 1e-05, %v76_v18 }
 0x121   :  { %v75_v20 = vpop.xlane.xlu1 %74 }
 0x122   :  { %1762 = vrsqrt.f32 %v78_v19  ;;  %v77_v21 = vmul.f32 0.03125, %v75_v20 }
 0x124   :  { %v79_v22 = vadd.f32 1e-05, %v77_v21 }
 0x126   :  { %1764 = vrsqrt.f32 %v79_v22 }
 0x12f   :  { %v1763_v23 = vpop.eup %1762 }
 0x130   :  { %v82_v24 = vmul.f32 %v1763_v23, %v66_v6 }
 0x132   :  { %v90_v28 = vmul.f32 %v1469_v25, %v82_v24 }
 0x133   :  { %v1765_v26 = vpop.eup %1764 }
 0x134   :  { %v83_v27 = vmul.f32 %v1765_v26, %v67_v10  ;;  %v98_v31 = vadd.f32 %v1470_v29, %v90_v28 }
 0x136   :  { %v91_v30 = vmul.f32 %v1469_v25, %v83_v27 }
 0x138   :  { %v99_v32 = vadd.f32 %v1470_v29, %v91_v30 }
 0x13a   :  { %v100_v33 = vpack.c.bf16 %v99_v32, %v98_v31 }
 0x13c   :  { %1572 = vmatmul.mubr.msk.bf16.vlgmr.msra.gmra.mxu0 %vm56_vm0, %v100_v33 }
 0x13d   :  { %1577 = vmatprep.mubr.msk.bf16.mxu0 %vm1811_vm1, %v1810_v14 }
 0x1fc   :  { %v161_v34 = vpop.f32.mrf.mxu0 }
 0x1fd   :  { %v162_v38 = vadd.f32 %v1471_v35, %v161_v34 }
 0x1fe   :  { %v1573_v36 = vpop.f32.mrf.mxu0 }
 0x1ff   :  { %v188_v43 = vpack.c.bf16 %v162_v38, %v162_v38 }
 0x200   :  { %v164_v37 = vpop.f32.mrf.mxu0 }
 0x201   :  { %v165_v39 = vadd.f32 %v1471_v35, %v164_v37 }
 0x202   :  { %v1574_v40 = vpop.f32.mrf.mxu0 }
 0x203   :  { %v1722_v41 = vpack.i.bf16 %v165_v39, %v162_v38  ;;  %v1939_v42 = vpack.c.bf16 %v165_v39, %v165_v39 }
 0x205   :  { %1723 = vrot.lane.b32.xlu1 %v1722_v41, %s1812_s2  ;;  %1718 = vrot.lane.b32.xlu0 %v1722_v41, %s1813_s3 }
 0x209   :  { %1728 = vrot.lane.b32.xlu1 %v1722_v41, %s1814_s25  ;;  %247 = vrot.lane.b32.xlu0 %v1939_v42, %s1815_s26 }
 0x20d   :  { %197 = vrot.lane.b32.xlu1 %v188_v43, %s1815_s26 }
 0x277   :  { %v1724_v44 = vpop.permute.xlu1 %1723  ;;  %v1719_v45 = vpop.permute.xlu0 %1718 }
 0x278   :  { %v1721_v46 = vunpack.i.h.bf16 %v1719_v45  ;;  %v1720_v47 = vunpack.i.l.bf16 %v1719_v45  ;;  %v1726_v48 = vunpack.i.h.bf16 %v1724_v44  ;;  %v1725_v49 = vunpack.i.l.bf16 %v1724_v44 }
 0x27a   :  { %v1942_v50 = vpack.c.bf16 %v1721_v46, %v1721_v46  ;;  %v1944_v51 = vpack.c.bf16 %v1720_v47, %v1720_v47  ;;  %v1948_v53 = vpack.c.bf16 %v1726_v48, %v1726_v48  ;;  %v1950_v54 = vpack.c.bf16 %v1725_v49, %v1725_v49 }
 0x27b   :  { %v1729_v52 = vpop.permute.xlu1 %1728  ;;  %v248_v61 = vpop.permute.xlu0 %247 }
 0x27c   :  { %296 = vrot.lane.b32.xlu1 %v1944_v51, %s1815_s26  ;;  %345 = vrot.lane.b32.xlu0 %v1942_v50, %s1815_s26  ;;  %v1731_v55 = vunpack.i.h.bf16 %v1729_v52  ;;  %v1730_v56 = vunpack.i.l.bf16 %v1729_v52  ;;  %v253_v62 = vsel %vm199_vm2, %v248_v61, 0 }
 0x27e   :  { %v1955_v59 = vpack.c.bf16 %v1731_v55, %v1731_v55  ;;  %v1957_v60 = vpack.c.bf16 %v1730_v56, %v1730_v56 }
 0x27f   :  { %v198_v57 = vpop.permute.xlu1 %197 }
 0x280   :  { %v204_v58 = vsel %vm199_vm2, %v198_v57, 0  ;;  %394 = vrot.lane.b32.xlu1 %v1950_v54, %s1815_s26  ;;  %443 = vrot.lane.b32.xlu0 %v1948_v53, %s1815_s26 }
 0x281   :  { %1576 = vmatpush3.bf16.xpose.msra.mxu0 %v204_v58 }
 0x282   :  { %1581 = vmatprep.subr.bf16.mxu0 %v1810_v14 }
 0x284   :  { %492 = vrot.lane.b32.xlu1 %v1957_v60, %s1815_s26  ;;  %541 = vrot.lane.b32.xlu0 %v1955_v59, %s1815_s26 }
 0x288   :  { %1578 = vmatmul.mubr.msk.bf16.vlgmr.msra.gmra.mxu0 %vm199_vm2, %v188_v43  ;;  %702 = vrot.lane.b32.xlu1 %v188_v43, %s1816_s5 }
 0x289   :  { %1582 = vmatpush3.bf16.xpose.msra.mxu0 %v253_v62  ;;  %1583 = vmatprep.mubr.msk.bf16.mxu0 %vm1811_vm1, %v1810_v14 }
 0x28a   :  { %1593 = vmatprep.subr.bf16.mxu0 %v1810_v14 }
 0x290   :  { %1584 = vmatmul.mubr.msk.bf16.vlgmr.msra.gmra.mxu0 %vm199_vm2, %v1939_v42 }
 0x291   :  { %1595 = vmatprep.mubr.msk.bf16.mxu0 %vm1811_vm1, %v1810_v14 }
 0x2ee   :  { %v297_v63 = vpop.permute.xlu1 %296  ;;  %v346_v2 = vpop.permute.xlu0 %345 }
 0x2ef   :  { %v351_v3 = vsel %vm199_vm2, %v346_v2, 0  ;;  %v302_v4 = vsel %vm199_vm2, %v297_v63, 0 }
 0x2f0   :  { %1588 = vmatpush3.bf16.xpose.msra.mxu1 %v302_v4  ;;  %1594 = vmatpush3.bf16.xpose.msra.mxu0 %v351_v3 }
 0x2f1   :  { %1599 = vmatprep.subr.bf16.mxu1 %v1810_v14  ;;  %1605 = vmatprep.subr.bf16.mxu0 %v1810_v14 }
 0x2f2   :  { %v395_v5 = vpop.permute.xlu1 %394  ;;  %v444_v6 = vpop.permute.xlu0 %443 }
 0x2f3   :  { %v400_v7 = vsel %vm199_vm2, %v395_v5, 0  ;;  %v449_v8 = vsel %vm199_vm2, %v444_v6, 0 }
 0x2f6   :  { %v493_v9 = vpop.permute.xlu1 %492  ;;  %v542_v10 = vpop.permute.xlu0 %541 }
 0x2f7   :  { %1590 = vmatmul.mubr.msk.bf16.vlgmr.msra.gmra.mxu1 %vm199_vm2, %v1944_v51  ;;  %1596 = vmatmul.mubr.msk.bf16.vlgmr.msra.gmra.mxu0 %vm199_vm2, %v1942_v50  ;;  %v498_v11 = vsel %vm199_vm2, %v493_v9, 0  ;;  %v547_v12 = vsel %vm199_vm2, %v542_v10, 0 }
 0x2f8   :  { %1600 = vmatpush3.bf16.xpose.msra.mxu1 %v400_v7  ;;  %1606 = vmatpush3.bf16.xpose.msra.mxu0 %v449_v8 }
 0x2f9   :  { %1601 = vmatprep.mubr.msk.bf16.mxu1 %vm1811_vm1, %v1810_v14  ;;  %1607 = vmatprep.mubr.msk.bf16.mxu0 %vm1811_vm1, %v1810_v14 }
 0x2fa   :  { %1611 = vmatprep.subr.bf16.mxu1 %v1810_v14  ;;  %1617 = vmatprep.subr.bf16.mxu0 %v1810_v14  ;;  %v703_v13 = vpop.permute.xlu1 %702 }
 0x2fb   :  { %v709_v15 = vsel %vm707_vm3, %v703_v13, 0 }
 0x2ff   :  { %1602 = vmatmul.mubr.msk.bf16.vlgmr.msra.gmra.mxu1 %vm199_vm2, %v1950_v54  ;;  %1608 = vmatmul.mubr.msk.bf16.vlgmr.msra.gmra.mxu0 %vm199_vm2, %v1948_v53 }
 0x300   :  { %1612 = vmatpush3.bf16.xpose.msra.mxu1 %v498_v11  ;;  %1618 = vmatpush3.bf16.xpose.msra.mxu0 %v547_v12 }
 0x301   :  { %1613 = vmatprep.mubr.msk.bf16.mxu1 %vm1811_vm1, %v1810_v14  ;;  %1619 = vmatprep.mubr.msk.bf16.mxu0 %vm1811_vm1, %v1810_v14 }
 0x302   :  { %1623 = vmatprep.subr.bf16.mxu1 %v1810_v14  ;;  %1629 = vmatprep.subr.bf16.mxu0 %v1810_v14 }
 0x307   :  { %1614 = vmatmul.mubr.msk.bf16.vlgmr.msra.gmra.mxu1 %vm199_vm2, %v1957_v60  ;;  %1620 = vmatmul.mubr.msk.bf16.vlgmr.msra.gmra.mxu0 %vm199_vm2, %v1955_v59 }
 0x308   :  { %1624 = vmatpush3.bf16.msra.mxu1 %v709_v15  ;;  %1631 = vmatprep.mubr.msk.bf16.mxu0 %vm1811_vm1, %v1810_v14 }
 0x309   :  { %1625 = vmatprep.mubr.msk.bf16.mxu1 %vm1811_vm1, %v1810_v14  ;;  %1635 = vmatprep.subr.bf16.mxu1 %v1810_v14 }
 0x348   :  { %v240_v16 = vpop.f32.mrf.mxu0 }
 0x349   :  { %v589_v18 = vmul.f32 0.35355338, %v240_v16 }
 0x34a   :  { %v1579_v19 = vpop.f32.mrf.mxu0 }
 0x34b   :  { %v2013_v20 = vadd.f32 %v597_v17, %v589_v18 }
 0x34c   :  { %v243_v21 = vpop.f32.mrf.mxu0 }
 0x34d   :  { %v606_v22 = vsel %vm199_vm2, %v2013_v20, -inf }
 0x34e   :  { %607 = vmax.xlane.f32.xlu1 %v606_v22  ;;  %v1580_v23 = vpop.f32.mrf.mxu0 }
 0x350   :  { %v289_v24 = vpop.f32.mrf.mxu0 }
 0x351   :  { %v590_v25 = vmul.f32 0.35355338, %v289_v24 }
 0x352   :  { %v1585_v26 = vpop.f32.mrf.mxu0 }
 0x353   :  { %v599_v27 = vadd.f32 %v597_v17, %v590_v25 }
 0x354   :  { %v292_v28 = vpop.f32.mrf.mxu0 }
 0x355   :  { %v609_v29 = vsel %vm199_vm2, %v599_v27, -inf }
 0x356   :  { %610 = vmax.xlane.f32.xlu0 %v609_v29  ;;  %v1586_v30 = vpop.f32.mrf.mxu0 }
 0x3b7   :  { %v338_v31 = vpop.f32.mrf.mxu1  ;;  %v387_v32 = vpop.f32.mrf.mxu0 }
 0x3b8   :  { %v591_v33 = vmul.f32 0.35355338, %v338_v31  ;;  %v592_v34 = vmul.f32 0.35355338, %v387_v32 }
 0x3b9   :  { %v1591_v35 = vpop.f32.mrf.mxu1  ;;  %v1597_v36 = vpop.f32.mrf.mxu0 }
 0x3ba   :  { %v600_v37 = vadd.f32 %v597_v17, %v591_v33  ;;  %v601_v41 = vadd.f32 %v597_v17, %v592_v34 }
 0x3bb   :  { %v341_v38 = vpop.f32.mrf.mxu1  ;;  %v390_v39 = vpop.f32.mrf.mxu0 }
 0x3bc   :  { %v612_v40 = vsel %vm199_vm2, %v600_v37, -inf  ;;  %v615_v49 = vsel %vm199_vm2, %v601_v41, -inf }
 0x3bd   :  { %v1592_v43 = vpop.f32.mrf.mxu1  ;;  %613 = vmax.xlane.f32.xlu0 %v612_v40  ;;  %v1598_v44 = vpop.f32.mrf.mxu0 }
 0x3bf   :  { %v436_v45 = vpop.f32.mrf.mxu1  ;;  %v485_v46 = vpop.f32.mrf.mxu0 }
 0x3c0   :  { %v593_v47 = vmul.f32 0.35355338, %v436_v45  ;;  %v594_v48 = vmul.f32 0.35355338, %v485_v46 }
 0x3c1   :  { %v1603_v52 = vpop.f32.mrf.mxu1  ;;  %616 = vmax.xlane.f32.xlu0 %v615_v49  ;;  %v1609_v55 = vpop.f32.mrf.mxu0 }
 0x3c2   :  { %v602_v56 = vadd.f32 %v597_v17, %v593_v47  ;;  %v2020_v57 = vadd.f32 %v597_v17, %v594_v48 }
 0x3c3   :  { %v439_v58 = vpop.f32.mrf.mxu1  ;;  %v488_v61 = vpop.f32.mrf.mxu0 }
 0x3c4   :  { %v618_v62 = vsel %vm199_vm2, %v602_v56, -inf  ;;  %v621_v63 = vsel %vm199_vm2, %v2020_v57, -inf }
 0x3c5   :  { %v1604_v2 = vpop.f32.mrf.mxu1  ;;  %619 = vmax.xlane.f32.xlu1 %v618_v62  ;;  %622 = vmax.xlane.f32.xlu0 %v621_v63  ;;  %v1610_v3 = vpop.f32.mrf.mxu0 }
 0x3c7   :  { %v534_v4 = vpop.f32.mrf.mxu1  ;;  %v583_v5 = vpop.f32.mrf.mxu0 }
 0x3c8   :  { %v595_v6 = vmul.f32 0.35355338, %v534_v4  ;;  %v596_v7 = vmul.f32 0.35355338, %v583_v5 }
 0x3c9   :  { %v1615_v8 = vpop.f32.mrf.mxu1  ;;  %v1621_v9 = vpop.f32.mrf.mxu0 }
 0x3ca   :  { %v604_v10 = vadd.f32 %v597_v17, %v595_v6  ;;  %v2025_v11 = vadd.f32 %v597_v17, %v596_v7 }
 0x3cb   :  { %v537_v12 = vpop.f32.mrf.mxu1  ;;  %v586_v13 = vpop.f32.mrf.mxu0 }
 0x3cc   :  { %v624_v15 = vsel %vm199_vm2, %v604_v10, -inf  ;;  %v627_v16 = vsel %vm199_vm2, %v2025_v11, -inf }
 0x3cd   :  { %v1616_v18 = vpop.f32.mrf.mxu1  ;;  %625 = vmax.xlane.f32.xlu1 %v624_v15  ;;  %628 = vmax.xlane.f32.xlu0 %v627_v16  ;;  %v1622_v19 = vpop.f32.mrf.mxu0 }
 0x3d7   :  { %v608_v22 = vpop.xlane.xlu1 %607 }
 0x3d8   :  { %v630_v23 = vsub.f32 %v2013_v20, %v608_v22 }
 0x3da   :  { %v638_v25 = vmul.f32 1.442695, %v630_v23 }
 0x3de   :  { %799 = vrot.lane.b32.xlu1 %v1944_v51, %s1816_s5 }
 0x3df   :  { %v611_v17 = vpop.xlane.xlu0 %610 }
 0x3e0   :  { %v631_v21 = vsub.f32 %v599_v27, %v611_v17 }
 0x3e2   :  { %847 = vrot.lane.b32.xlu1 %v1942_v50, %s1816_s5  ;;  %v640_v24 = vmul.f32 1.442695, %v631_v21 }
 0x3e3   :  { %751 = vrot.lane.b32.xlu0 %v1939_v42, %s1816_s5 }
 0x3e4   :  { %1766 = vpow2.f32 %v640_v24 }
 0x3e5   :  { %1768 = vpow2.f32 %v638_v25 }
 0x3f1   :  { %v1767_v26 = vpop.eup %1766 }
 0x3f2   :  { %v657_v28 = vsel %vm199_vm2, %v1767_v26, 0.0  ;;  %v2038_v29 = vpop.eup %1768 }
 0x3f3   :  { %v654_v50 = vsel %vm199_vm2, %v2038_v29, 0.0 }
 0x402   :  { %658 = vadd.xlane.f32.xlu0 %v657_v28 }
 0x406   :  { %655 = vadd.xlane.f32.xlu1 %v654_v50 }
 0x417   :  { %895 = vrot.lane.b32.xlu1 %v1950_v54, %s1816_s5 }
 0x446   :  { %v614_v42 = vpop.xlane.xlu0 %613 }
 0x447   :  { %v632_v51 = vsub.f32 %v600_v37, %v614_v42 }
 0x449   :  { %v642_v20 = vmul.f32 1.442695, %v632_v51 }
 0x44a   :  { %v617_v27 = vpop.xlane.xlu0 %616 }
 0x44b   :  { %1770 = vpow2.f32 %v642_v20  ;;  %v633_v30 = vsub.f32 %v601_v41, %v617_v27 }
 0x44d   :  { %v644_v31 = vmul.f32 1.442695, %v633_v30 }
 0x44e   :  { %v620_v32 = vpop.xlane.xlu1 %619  ;;  %v623_v35 = vpop.xlane.xlu0 %622 }
 0x44f   :  { %1772 = vpow2.f32 %v644_v31  ;;  %v634_v33 = vsub.f32 %v602_v56, %v620_v32  ;;  %v635_v52 = vsub.f32 %v2020_v57, %v623_v35 }
 0x451   :  { %v646_v34 = vmul.f32 1.442695, %v634_v33  ;;  %v648_v55 = vmul.f32 1.442695, %v635_v52 }
 0x453   :  { %1774 = vpow2.f32 %v646_v34 }
 0x456   :  { %v626_v36 = vpop.xlane.xlu1 %625  ;;  %v629_v38 = vpop.xlane.xlu0 %628 }
 0x457   :  { %v636_v39 = vsub.f32 %v604_v10, %v626_v36  ;;  %v637_v56 = vsub.f32 %v2025_v11, %v629_v38 }
 0x458   :  { %v2044_v40 = vpop.eup %1770 }
 0x459   :  { %v650_v43 = vmul.f32 1.442695, %v636_v39  ;;  %v660_v54 = vsel %vm199_vm2, %v2044_v40, 0.0  ;;  %v652_v58 = vmul.f32 1.442695, %v637_v56 }
 0x45a   :  { %661 = vadd.xlane.f32.xlu1 %v660_v54  ;;  %v752_v37 = vpop.permute.xlu0 %751  ;;  %v800_v61 = vpop.permute.xlu1 %799 }
 0x45b   :  { %1776 = vpow2.f32 %v650_v43  ;;  %v757_v41 = vsel %vm707_vm3, %v752_v37, 0  ;;  %v805_v11 = vsel %vm707_vm3, %v800_v61, 0 }
 0x45c   :  { %v2049_v44 = vpop.eup %1772  ;;  %1630 = vmatpush3.bf16.msra.mxu0 %v757_v41  ;;  %1778 = vpow2.f32 %v648_v55 }
 0x45d   :  { %v663_v45 = vsel %vm199_vm2, %v2049_v44, 0.0  ;;  %1641 = vmatprep.subr.bf16.mxu0 %v1810_v14  ;;  %1780 = vpow2.f32 %v652_v58 }
 0x45e   :  { %664 = vadd.xlane.f32.xlu0 %v663_v45  ;;  %v848_v62 = vpop.permute.xlu1 %847 }
 0x45f   :  { %v853_v8 = vsel %vm707_vm3, %v848_v62, 0 }
 0x460   :  { %v2054_v46 = vpop.eup %1774 }
 0x461   :  { %v666_v47 = vsel %vm199_vm2, %v2054_v46, 0.0 }
 0x462   :  { %667 = vadd.xlane.f32.xlu1 %v666_v47 }
 0x468   :  { %v2058_v48 = vpop.eup %1776 }
 0x469   :  { %v672_v49 = vsel %vm199_vm2, %v2058_v48, 0.0  ;;  %v2068_v2 = vpop.eup %1778 }
 0x46a   :  { %673 = vadd.xlane.f32.xlu1 %v672_v49  ;;  %v2072_v57 = vpop.eup %1780 }
 0x474   :  { %943 = vrot.lane.b32.xlu0 %v1948_v53, %s1816_s5  ;;  %v669_v53 = vsel %vm199_vm2, %v2068_v2, 0.0 }
 0x47b   :  { %991 = vrot.lane.b32.xlu1 %v1957_v60, %s1816_s5  ;;  %v675_v60 = vsel %vm199_vm2, %v2072_v57, 0.0 }
 0x48b   :  { %v659_v63 = vpop.xlane.xlu0 %658 }
 0x48c   :  { %1782 = vrcp.f32 %v659_v63 }
 0x48f   :  { %v656_v3 = vpop.xlane.xlu1 %655 }
 0x490   :  { %1784 = vrcp.f32 %v656_v3 }
 0x493   :  { %670 = vadd.xlane.f32.xlu0 %v669_v53  ;;  %v896_v12 = vpop.permute.xlu1 %895 }
 0x494   :  { %v901_v23 = vsel %vm707_vm3, %v896_v12, 0 }
 0x497   :  { %676 = vadd.xlane.f32.xlu0 %v675_v60 }
 0x499   :  { %v1783_v4 = vpop.eup %1782 }
 0x49a   :  { %v687_v5 = vmul.f32 %v1783_v4, %v1767_v26 }
 0x49c   :  { %v695_v6 = vpack.c.bf16 %v687_v5, %v687_v5 }
 0x49d   :  { %v1785_v7 = vpop.eup %1784 }
 0x49e   :  { %1632 = vmatmul.mubr.msk.bf16.vlgmr.msra.gmra.mxu0 %vm199_vm2, %v695_v6  ;;  %v686_v9 = vmul.f32 %v1785_v7, %v2038_v29 }
 0x49f   :  { %1642 = vmatpush3.bf16.msra.mxu0 %v853_v8  ;;  %1643 = vmatprep.mubr.msk.bf16.mxu0 %vm1811_vm1, %v1810_v14  ;;  %v1749_v8 = vld [vmem:[%s2236_s6 + $0x8] sm:$0xff]  }
 0x4a0   :  { %v694_v10 = vpack.c.bf16 %v686_v9, %v686_v9  ;;  %1653 = vmatprep.subr.bf16.mxu0 %v1810_v14  ;;  %v1750_v9 = vld [vmem:[%s2236_s6] sm:$0xff]  }
 0x4a2   :  { %1626 = vmatmul.mubr.msk.bf16.vlgmr.msra.gmra.mxu1 %vm199_vm2, %v694_v10 }
 0x4a3   :  { %1636 = vmatpush3.bf16.msra.mxu1 %v805_v11  ;;  %1637 = vmatprep.mubr.msk.bf16.mxu1 %vm1811_vm1, %v1810_v14 }
 0x4a4   :  { %1647 = vmatprep.subr.bf16.mxu1 %v1810_v14 }
 0x4ad   :  { %1039 = vrot.lane.b32.xlu0 %v1955_v59, %s1816_s5 }
 0x4e3   :  { %v662_v13 = vpop.xlane.xlu1 %661 }
 0x4e4   :  { %1786 = vrcp.f32 %v662_v13 }
 0x4e7   :  { %v665_v15 = vpop.xlane.xlu0 %664 }
 0x4e8   :  { %1788 = vrcp.f32 %v665_v15 }
 0x4eb   :  { %v668_v16 = vpop.xlane.xlu1 %667  ;;  %v944_v24 = vpop.permute.xlu0 %943 }
 0x4ec   :  { %1790 = vrcp.f32 %v668_v16  ;;  %v949_v28 = vsel %vm707_vm3, %v944_v24, 0 }
 0x4f1   :  { %v1787_v18 = vpop.eup %1786 }
 0x4f2   :  { %v688_v19 = vmul.f32 %v1787_v18, %v2044_v40 }
 0x4f3   :  { %v674_v17 = vpop.xlane.xlu1 %673 }
 0x4f4   :  { %1792 = vrcp.f32 %v674_v17  ;;  %v696_v21 = vpack.c.bf16 %v688_v19, %v688_v19 }
 0x4f5   :  { %v1789_v22 = vpop.eup %1788 }
 0x4f6   :  { %1638 = vmatmul.mubr.msk.bf16.vlgmr.msra.gmra.mxu1 %vm199_vm2, %v696_v21  ;;  %v689_v59 = vmul.f32 %v1789_v22, %v2049_v44 }
 0x4f7   :  { %1648 = vmatpush3.bf16.msra.mxu1 %v901_v23  ;;  %1649 = vmatprep.mubr.msk.bf16.mxu1 %vm1811_vm1, %v1810_v14  ;;  %v992_v50 = vpop.permute.xlu1 %991 }
 0x4f8   :  { %v697_v25 = vpack.c.bf16 %v689_v59, %v689_v59  ;;  %1659 = vmatprep.subr.bf16.mxu1 %v1810_v14  ;;  %v997_v51 = vsel %vm707_vm3, %v992_v50, 0 }
 0x4f9   :  { %v1791_v26 = vpop.eup %1790 }
 0x4fa   :  { %1644 = vmatmul.mubr.msk.bf16.vlgmr.msra.gmra.mxu0 %vm199_vm2, %v697_v25  ;;  %v690_v29 = vmul.f32 %v1791_v26, %v2054_v46 }
 0x4fb   :  { %1654 = vmatpush3.bf16.msra.mxu0 %v949_v28  ;;  %1655 = vmatprep.mubr.msk.bf16.mxu0 %vm1811_vm1, %v1810_v14 }
 0x4fc   :  { %v698_v42 = vpack.c.bf16 %v690_v29, %v690_v29  ;;  %1665 = vmatprep.subr.bf16.mxu0 %v1810_v14 }
 0x4fe   :  { %1650 = vmatmul.mubr.msk.bf16.vlgmr.msra.gmra.mxu1 %vm199_vm2, %v698_v42 }
 0x4ff   :  { %1660 = vmatpush3.bf16.msra.mxu1 %v997_v51  ;;  %1661 = vmatprep.mubr.msk.bf16.mxu1 %vm1811_vm1, %v1810_v14 }
 0x500   :  { %1671 = vmatprep.subr.bf16.mxu1 %v1810_v14 }
 0x501   :  { %v1793_v20 = vpop.eup %1792 }
 0x502   :  { %v692_v27 = vmul.f32 %v1793_v20, %v2058_v48 }
 0x504   :  { %v700_v30 = vpack.c.bf16 %v692_v27, %v692_v27 }
 0x506   :  { %1662 = vmatmul.mubr.msk.bf16.vlgmr.msra.gmra.mxu1 %vm199_vm2, %v700_v30 }
 0x507   :  { %1675 = vmatprep.mubr.msk.bf16.mxu1 %vm1811_vm1, %v1810_v14  ;;  %1672 = vmatpush3.bf16.msra.mxu1 %v1749_v8 }
 0x508   :  { %1673 = vmatprep.subr.bf16.mxu1 %v1810_v14 }
 0x50b   :  { %1674 = vmatpush3.bf16.msra.mxu1 %v1750_v9 }
 0x50c   :  { %1687 = vmatprep.subr.bf16.mxu1 %v1810_v14 }
 0x51c   :  { %v671_v31 = vpop.xlane.xlu0 %670 }
 0x51d   :  { %1794 = vrcp.f32 %v671_v31 }
 0x520   :  { %v677_v32 = vpop.xlane.xlu0 %676 }
 0x521   :  { %1796 = vrcp.f32 %v677_v32 }
 0x524   :  { %v1040_v35 = vpop.permute.xlu0 %1039 }
 0x525   :  { %v1045_v39 = vsel %vm707_vm3, %v1040_v35, 0 }
 0x52a   :  { %v1795_v33 = vpop.eup %1794 }
 0x52b   :  { %v691_v34 = vmul.f32 %v1795_v33, %v2068_v2  ;;  %v1491_v33 = vld [vmem:[%s2237_s7] ss:$0 sm:$0xff] }
 0x52d   :  { %v699_v36 = vpack.c.bf16 %v691_v34, %v691_v34 }
 0x52e   :  { %v1797_v38 = vpop.eup %1796 }
 0x52f   :  { %1656 = vmatmul.mubr.msk.bf16.vlgmr.msra.gmra.mxu0 %vm199_vm2, %v699_v36  ;;  %v693_v40 = vmul.f32 %v1797_v38, %v2072_v57 }
 0x530   :  { %1666 = vmatpush3.bf16.msra.mxu0 %v1045_v39  ;;  %1667 = vmatprep.mubr.msk.bf16.mxu0 %vm1811_vm1, %v1810_v14 }
 0x531   :  { %1679 = vmatprep.subr.bf16.mxu0 %v1810_v14  ;;  %v701_v43 = vpack.c.bf16 %v693_v40, %v693_v40 }
 0x537   :  { %1668 = vmatmul.mubr.msk.bf16.vlgmr.msra.gmra.mxu0 %vm199_vm2, %v701_v43 }
 0x538   :  { %1683 = vmatprep.mubr.msk.bf16.mxu0 %vm1811_vm1, %v1810_v14 }
 0x55e   :  { %v793_v54 = vpop.f32.mrf.mxu0 }
 0x560   :  { %v1633_v37 = vpop.f32.mrf.mxu0 }
 0x562   :  { %v745_v41 = vpop.f32.mrf.mxu1  ;;  %v796_v44 = vpop.f32.mrf.mxu0 }
 0x564   :  { %v1627_v45 = vpop.f32.mrf.mxu1  ;;  %v1634_v46 = vpop.f32.mrf.mxu0 }
 0x566   :  { %v748_v47 = vpop.f32.mrf.mxu1 }
 0x568   :  { %v1628_v48 = vpop.f32.mrf.mxu1 }
 0x5b6   :  { %v841_v49 = vpop.f32.mrf.mxu1 }
 0x5b8   :  { %v1639_v52 = vpop.f32.mrf.mxu1 }
 0x5ba   :  { %v844_v55 = vpop.f32.mrf.mxu1  ;;  %v889_v56 = vpop.f32.mrf.mxu0 }
 0x5bb   :  { %v1732_v58 = vpack.i.bf16 %v889_v56, %v841_v49  ;;  %v1751_v56 = vld [vmem:[%s2239_s10 + $0x8] sm:$0xff]  }
 0x5bc   :  { %v1640_v61 = vpop.f32.mrf.mxu1  ;;  %v1645_v62 = vpop.f32.mrf.mxu0  ;;  %1680 = vmatpush3.bf16.msra.mxu0 %v1751_v56 }
 0x5bd   :  { %1733 = vrot.lane.b32.xlu1 %v1732_v58, %s1817_s1  ;;  %v1752_v58 = vld [vmem:[%s2239_s10] sm:$0xff]   ;;  %1681 = vmatprep.subr.bf16.mxu0 %v1810_v14 }
 0x5be   :  { %v892_v63 = vpop.f32.mrf.mxu0  ;;  %v937_v2 = vpop.f32.mrf.mxu1 }
 0x5c0   :  { %v1646_v3 = vpop.f32.mrf.mxu0  ;;  %v1651_v53 = vpop.f32.mrf.mxu1  ;;  %1682 = vmatpush3.bf16.msra.mxu0 %v1752_v58 }
 0x5c2   :  { %v940_v57 = vpop.f32.mrf.mxu1 }
 0x5c4   :  { %v1652_v60 = vpop.f32.mrf.mxu1 }
 0x5c5   :  { %v1495_v60 = vld [vmem:[%s2240_s8] ss:$0 sm:$0xff] }
 0x5c6   :  { %v1033_v4 = vpop.f32.mrf.mxu1 }
 0x5c8   :  { %v1663_v5 = vpop.f32.mrf.mxu1 }
 0x5c9   :  { %v1496_v5 = vld [vmem:[%s2241_s9] ss:$0 sm:$0xff] }
 0x5ca   :  { %v1036_v6 = vpop.f32.mrf.mxu1 }
 0x5cc   :  { %v1664_v7 = vpop.f32.mrf.mxu1 }
 0x5ef   :  { %v985_v10 = vpop.f32.mrf.mxu0 }
 0x5f0   :  { %v1737_v11 = vpack.i.bf16 %v985_v10, %v937_v2 }
 0x5f1   :  { %v1657_v12 = vpop.f32.mrf.mxu0 }
 0x5f2   :  { %1738 = vrot.lane.b32.xlu0 %v1737_v11, %s1818_s0 }
 0x5f3   :  { %v988_v13 = vpop.f32.mrf.mxu0 }
 0x5f5   :  { %v1658_v15 = vpop.f32.mrf.mxu0 }
 0x5f7   :  { %v1081_v16 = vpop.f32.mrf.mxu0 }
 0x5f8   :  { %v1742_v18 = vpack.i.bf16 %v1081_v16, %v1033_v4  ;;  %v1754_v16 = vld [vmem:[%s2242_s12 + $0x38] sm:$0xff]  }
 0x5f9   :  { %v1669_v19 = vpop.f32.mrf.mxu0 }
 0x5fa   :  { %1743 = vrot.lane.b32.xlu1 %v1742_v18, %s1819_s17  ;;  %v1755_v18 = vld [vmem:[%s2242_s12 + $0x30] sm:$0xff]   ;;  %v1756_v19 = vld [vmem:[%s2242_s12 + $0x28] sm:$0xff]  }
 0x5fb   :  { %v1084_v17 = vpop.f32.mrf.mxu0 }
 0x5fc   :  { %v1757_v17 = vld [vmem:[%s2242_s12 + $0x20] sm:$0xff]  }
 0x5fd   :  { %v1670_v21 = vpop.f32.mrf.mxu0 }
 0x5fe   :  { %v1758_v21 = vld [vmem:[%s2242_s12 + $0x18] sm:$0xff]  }
 0x62f   :  { %v1734_v22 = vpop.permute.xlu1 %1733 }
 0x630   :  { %v1736_v59 = vunpack.i.h.bf16 %v1734_v22  ;;  %v1735_v24 = vunpack.i.l.bf16 %v1734_v22  ;;  %v1759_v22 = vld [vmem:[%s2242_s12 + $0x10] sm:$0xff]  }
 0x632   :  { %v1112_v29 = vsel %vm199_vm2, %v793_v54, %v1736_v59  ;;  %v1111_v50 = vsel %vm199_vm2, %v745_v41, %v1735_v24  ;;  %v1761_v59 = vld [vmem:[%s2242_s12] sm:$0xff]  }
 0x633   :  { %v1499_v24 = vld [vmem:[%s2243_s11] ss:$0 sm:$0xff] }
 0x664   :  { %v1739_v23 = vpop.permute.xlu0 %1738 }
 0x665   :  { %v1741_v25 = vunpack.i.h.bf16 %v1739_v23  ;;  %v1740_v26 = vunpack.i.l.bf16 %v1739_v23  ;;  %v1760_v23 = vld [vmem:[%s2242_s12 + $0x8] sm:$0xff]  }
 0x667   :  { %v1115_v20 = vsel %vm1113_vm4, %v1112_v29, %v1741_v25  ;;  %v1114_v27 = vsel %vm1113_vm4, %v1111_v50, %v1740_v26 }
 0x66c   :  { %v1744_v28 = vpop.permute.xlu1 %1743 }
 0x66d   :  { %v1746_v42 = vunpack.i.h.bf16 %v1744_v28  ;;  %v1745_v51 = vunpack.i.l.bf16 %v1744_v28 }
 0x66f   :  { %v1118_v30 = vsel %vm1116_vm5, %v1115_v20, %v1746_v42  ;;  %v1117_v31 = vsel %vm1116_vm5, %v1114_v27, %v1745_v51 }
 0x670   :  { %v1119_v32 = vpack.c.bf16 %v1118_v30, %v1117_v31 }
 0x672   :  { %1676 = vmatmul.mubr.msk.bf16.vlgmr.msra.gmra.mxu1 %vm56_vm0, %v1119_v32 }
 0x673   :  { %1703 = vmatprep.mubr.msk.bf16.mxu1 %vm1811_vm1, %v1810_v14  ;;  %1688 = vmatpush3.bf16.msra.mxu1 %v1754_v16 }
 0x674   :  { %1689 = vmatprep.subr.bf16.mxu1 %v1810_v14 }
 0x677   :  { %1690 = vmatpush3.bf16.msra.mxu1 %v1755_v18 }
 0x678   :  { %1691 = vmatprep.subr.bf16.mxu1 %v1810_v14 }
 0x67b   :  { %1692 = vmatpush3.bf16.msra.mxu1 %v1756_v19 }
 0x67c   :  { %1693 = vmatprep.subr.bf16.mxu1 %v1810_v14 }
 0x67f   :  { %1694 = vmatpush3.bf16.msra.mxu1 %v1757_v17 }
 0x680   :  { %1695 = vmatprep.subr.bf16.mxu1 %v1810_v14 }
 0x683   :  { %1696 = vmatpush3.bf16.msra.mxu1 %v1758_v21 }
 0x684   :  { %1697 = vmatprep.subr.bf16.mxu1 %v1810_v14 }
 0x687   :  { %1698 = vmatpush3.bf16.msra.mxu1 %v1759_v22 }
 0x688   :  { %1699 = vmatprep.subr.bf16.mxu1 %v1810_v14 }
 0x68b   :  { %1700 = vmatpush3.bf16.msra.mxu1 %v1760_v23 }
 0x68c   :  { %1701 = vmatprep.subr.bf16.mxu1 %v1810_v14 }
 0x68f   :  { %1702 = vmatpush3.bf16.msra.mxu1 %v1761_v59 }
 0x732   :  { %v1180_v34 = vpop.f32.mrf.mxu1 }
 0x733   :  { %v1181_v35 = vadd.f32 %v1491_v33, %v1180_v34 }
 0x734   :  { %v1677_v36 = vpop.f32.mrf.mxu1 }
 0x735   :  { %v1187_v38 = vadd.f32 %v1181_v35, %v1898_v0 }
 0x736   :  { %v1183_v39 = vpop.f32.mrf.mxu1 }
 0x737   :  { %1189 = vst.msk [vmem:[%s2238_s14] sm:$0xff] %vm56_vm0, %v1187_v38  ;;  %v1184_v40 = vadd.f32 %v1491_v33, %v1183_v39  ;;  %v1193_v43 = vsel %vm56_vm0, %v1187_v38, 0.0 }
 0x738   :  { %1194 = vadd.xlane.f32.xlu0 %v1193_v43  ;;  %v1678_v54 = vpop.f32.mrf.mxu1 }
 0x739   :  { %v1188_v37 = vadd.f32 %v1184_v40, %v1903_v1 }
 0x73b   :  { %1190 = vst.msk [vmem:[%s2238_s14 + $0x8] sm:$0xff] %vm56_vm0, %v1188_v37  ;;  %v1196_v0 = vsel %vm56_vm0, %v1188_v37, 0.0 }
 0x73c   :  { %1197 = vadd.xlane.f32.xlu1 %v1196_v0 }
 0x73e   :  { %v1443_v43 = vld [vmem:[%s2238_s14] sm:$0xff] }
 0x7c1   :  { %v1195_v41 = vpop.xlane.xlu0 %1194 }
 0x7c2   :  { %v1199_v44 = vmul.f32 0.03125, %v1195_v41  ;;  %v1444_v41 = vld [vmem:[%s2238_s14 + $0x8] sm:$0xff] }
 0x7c4   :  { %v1201_v45 = vsub.f32 %v1187_v38, %v1199_v44 }
 0x7c5   :  { %v1198_v46 = vpop.xlane.xlu1 %1197 }
 0x7c6   :  { %v1200_v47 = vmul.f32 0.03125, %v1198_v46  ;;  %v1203_v48 = vmul.f32 %v1201_v45, %v1201_v45  ;;  %v1514_v46 = vld [vmem:[%s2244_s13] ss:$0 sm:$0xff] }
 0x7c8   :  { %v1202_v49 = vsub.f32 %v1188_v37, %v1200_v47  ;;  %v1205_v52 = vsel %vm56_vm0, %v1203_v48, 0.0 }
 0x7c9   :  { %1206 = vadd.xlane.f32.xlu0 %v1205_v52 }
 0x7ca   :  { %v1204_v55 = vmul.f32 %v1202_v49, %v1202_v49 }
 0x7cc   :  { %v1208_v1 = vsel %vm56_vm0, %v1204_v55, 0.0 }
 0x7cd   :  { %1209 = vadd.xlane.f32.xlu0 %v1208_v1 }
 0x852   :  { %v1207_v61 = vpop.xlane.xlu0 %1206 }
 0x853   :  { %v1211_v62 = vmul.f32 0.03125, %v1207_v61 }
 0x855   :  { %v1213_v63 = vadd.f32 1e-05, %v1211_v62 }
 0x856   :  { %v1210_v2 = vpop.xlane.xlu0 %1209 }
 0x857   :  { %1798 = vrsqrt.f32 %v1213_v63  ;;  %v1212_v3 = vmul.f32 0.03125, %v1210_v2 }
 0x859   :  { %v1214_v53 = vadd.f32 1e-05, %v1212_v3 }
 0x85b   :  { %1800 = vrsqrt.f32 %v1214_v53 }
 0x864   :  { %v1799_v57 = vpop.eup %1798 }
 0x865   :  { %v1217_v4 = vmul.f32 %v1799_v57, %v1201_v45 }
 0x867   :  { %v1225_v6 = vmul.f32 %v1495_v60, %v1217_v4 }
 0x868   :  { %v1801_v7 = vpop.eup %1800 }
 0x869   :  { %v1233_v8 = vadd.f32 %v1496_v5, %v1225_v6  ;;  %v1218_v9 = vmul.f32 %v1801_v7, %v1202_v49 }
 0x86b   :  { %v1515_v10 = vpack.c.bf16 %v1233_v8, %v1233_v8  ;;  %v1226_v11 = vmul.f32 %v1495_v60, %v1218_v9 }
 0x86d   :  { %1244 = vst.msk [vmem:[#allocation2] sm:$0xf] %vm1243_vm6, %v1515_v10  ;;  %v1234_v12 = vadd.f32 %v1496_v5, %v1226_v11 }
 0x86f   :  { %v1516_v13 = vpack.c.bf16 %v1234_v12, %v1234_v12 }
 0x871   :  { %1245 = vst.msk [vmem:[#allocation2 + $0x4] sm:$0xf] %vm1243_vm6, %v1516_v13 }
 0x878   :  { %v1753_v15 = vld [vmem:[#allocation2] sm:$0xff]  }
 0x879   :  { %1684 = vmatmul.mubr.msk.bf16.vlgmr.msra.gmra.mxu0 %vm56_vm0, %v1753_v15 }
 0x939   :  { %v1314_v25 = vpop.f32.mrf.mxu0 }
 0x93a   :  { %v1315_v26 = vadd.f32 %v1499_v24, %v1314_v25 }
 0x93b   :  { %v1685_v28 = vpop.f32.mrf.mxu0 }
 0x93c   :  { %v1504_v29 = vmul.f32 -1.702, %v1315_v26 }
 0x93d   :  { %v1317_v50 = vpop.f32.mrf.mxu0 }
 0x93e   :  { %v1325_v42 = vmul.f32 1.442695, %v1504_v29  ;;  %v1318_v51 = vadd.f32 %v1499_v24, %v1317_v50 }
 0x93f   :  { %v1686_v20 = vpop.f32.mrf.mxu0 }
 0x940   :  { %1802 = vpow2.f32 %v1325_v42  ;;  %v1505_v27 = vmul.f32 -1.702, %v1318_v51 }
 0x942   :  { %v1327_v14 = vmul.f32 1.442695, %v1505_v27 }
 0x944   :  { %1804 = vpow2.f32 %v1327_v14 }
 0x94d   :  { %v1803_v30 = vpop.eup %1802 }
 0x94e   :  { %v1329_v31 = vadd.f32 1.0, %v1803_v30 }
 0x950   :  { %1806 = vrcp.f32 %v1329_v31 }
 0x951   :  { %v1805_v32 = vpop.eup %1804 }
 0x952   :  { %v1330_v33 = vadd.f32 1.0, %v1805_v32 }
 0x954   :  { %1808 = vrcp.f32 %v1330_v33 }
 0x95d   :  { %v1807_v34 = vpop.eup %1806 }
 0x95e   :  { %v1335_v36 = vmul.f32 %v1807_v34, %v1315_v26 }
 0x961   :  { %v1809_v35 = vpop.eup %1808 }
 0x962   :  { %v1336_v38 = vmul.f32 %v1809_v35, %v1318_v51 }
 0x964   :  { %v1337_v39 = vpack.c.bf16 %v1336_v38, %v1335_v36 }
 0x966   :  { %1704 = vmatmul.mubr.bf16.vlgmr.msra.gmra.mxu1 %v1337_v39 }
 0xa26   :  { %v1436_v40 = vpop.f32.mrf.mxu1 }
 0xa27   :  { %v1445_v54 = vadd.f32 %v1443_v43, %v1436_v40 }
 0xa28   :  { %v1705_v37 = vpop.f32.mrf.mxu1 }
 0xa29   :  { %1447 = vst.msk [vmem:[%s2238_s14] sm:$0xff] %vm56_vm0, %v1445_v54 }
 0xa2a   :  { %v1439_v0 = vpop.f32.mrf.mxu1 }
 0xa2b   :  { %v1446_v44 = vadd.f32 %v1444_v41, %v1439_v0 }
 0xa2c   :  { %v1706_v45 = vpop.f32.mrf.mxu1 }
 0xa2d   :  { %1448 = vst.msk [vmem:[%s2238_s14 + $0x8] sm:$0xff] %vm56_vm0, %v1446_v44 }
 0xa30   :  { %v1452_v47 = vld [vmem:[%s2238_s14] sm:$0xff] }
 0xa31   :  { %v1461_v48 = vadd.f32 %v1514_v46, %v1452_v47 }
 0xa33   :  { %1463 = vst.msk [vmem:[%s2238_s14] sm:$0xff] %vm56_vm0, %v1461_v48 }
 0xa34   :  { %v1453_v49 = vld [vmem:[%s2238_s14 + $0x8] sm:$0xff] }
 0xa35   :  { %v1462_v52 = vadd.f32 %v1514_v46, %v1453_v49 }
 0xa37   :  { %1464 = vst.msk [vmem:[%s2238_s14 + $0x8] sm:$0xff] %vm56_vm0, %v1462_v52 }

</bundles_post_ra>
